<compile_context>
chip_gen: v7x
topology: tpu7x:2x2x1
jax: 0.10.0
libtpu: 0.0.40
codegen_flags: <defaults>
</compile_context>

<pallas_src>
import functools
import math

import jax
import jax.numpy as jnp
from jax.experimental import pallas as pl
from jax.experimental.pallas import tpu as pltpu


_VMEM_LIMIT = 32 * 1024 * 1024  # safe on v5e/v6e/v7x; demo tiles are tiny anyway


def _pick_rows(total, target):
    """Largest row-tile that divides `total`, is <= target, and is 8-aligned."""
    tm = math.gcd(total, target)
    if tm % 8 != 0:
        tm = total
    return tm


# ---------------------------------------------------------------------------
# Kernel 1: fused Q/K/V projection  (row-tiled over B*S)
#   out[0] = q @ Wq + bq ; out[1] = k @ Wk + bk ; out[2] = v @ Wv + bv
# ---------------------------------------------------------------------------
def _qkv_proj_kernel(q_ref, k_ref, v_ref, wq_ref, wk_ref, wv_ref,
                     bq_ref, bk_ref, bv_ref, o_ref):
    o_ref[0] = (jnp.dot(q_ref[...], wq_ref[...],
                        preferred_element_type=jnp.float32) + bq_ref[...])
    o_ref[1] = (jnp.dot(k_ref[...], wk_ref[...],
                        preferred_element_type=jnp.float32) + bk_ref[...])
    o_ref[2] = (jnp.dot(v_ref[...], wv_ref[...],
                        preferred_element_type=jnp.float32) + bv_ref[...])


def pallas_qkv_proj(q2d, k2d, v2d, wq, wk, wv, bq, bk, bv, *, block_rows=256):
    BS, D = q2d.shape
    tm = _pick_rows(BS, block_rows)
    row_spec = pl.BlockSpec((tm, D), lambda i: (i, 0))
    w_spec = pl.BlockSpec((D, D), lambda i: (0, 0))      # resident across steps
    b_spec = pl.BlockSpec((1, D), lambda i: (0, 0))
    return pl.pallas_call(
        _qkv_proj_kernel,
        out_shape=jax.ShapeDtypeStruct((3, BS, D), jnp.float32),
        grid=(BS // tm,),
        in_specs=[row_spec, row_spec, row_spec,
                  w_spec, w_spec, w_spec,
                  b_spec, b_spec, b_spec],
        out_specs=pl.BlockSpec((3, tm, D), lambda i: (0, i, 0)),
        compiler_params=pltpu.CompilerParams(
            dimension_semantics=("parallel",),
            vmem_limit_bytes=_VMEM_LIMIT),
    )(q2d, k2d, v2d, wq, wk, wv,
      bq.reshape(1, D), bk.reshape(1, D), bv.reshape(1, D))


# ---------------------------------------------------------------------------
# Kernel 2: scaled dot-product attention, one batch element per grid step
#   (all heads processed in-kernel from lane-dense (S, D) blocks)
# ---------------------------------------------------------------------------
def _attention_kernel(qkv_ref, m_ref, ctx_ref, attn_ref, *, num_heads, scale):
    S = qkv_ref.shape[2]
    D = qkv_ref.shape[3]
    Dh = D // num_heads

    # Fold 1/sqrt(Dh) into Q: touches S*D elements instead of H*S*S.
    q = qkv_ref[0, 0] * scale          # (S, D)
    k = qkv_ref[1, 0]                  # (S, D)
    v = qkv_ref[2, 0]                  # (S, D)
    mask = m_ref[0]                    # (S, S), 1.0 == masked; shared by all heads
    masked = mask > 0.0
    neg = jnp.float32(-1e9)

    for h in range(num_heads):         # static unroll over heads
        lo = h * Dh
        qh = q[:, lo:lo + Dh]          # (S, Dh) static lane slices
        kh = k[:, lo:lo + Dh]
        vh = v[:, lo:lo + Dh]

        # QK^T without an explicit transpose: contract last dims of both.
        scores = jax.lax.dot_general(
            qh, kh, (((1,), (1,)), ((), ())),
            preferred_element_type=jnp.float32)            # (S, S)
        scores = jnp.where(masked, neg, scores)

        smax = jnp.max(scores, axis=-1, keepdims=True)
        e = jnp.exp(scores - smax)
        denom = jnp.sum(e, axis=-1, keepdims=True)
        attn = e * pl.reciprocal(denom, approx=True)       # EUP slot
        ctx = jnp.dot(attn, vh, preferred_element_type=jnp.float32)

        attn_ref[0, h] = attn
        ctx_ref[0, h] = ctx


def pallas_attention(qkv, mask_f, num_heads):
    _, B, S, D = qkv.shape
    Dh = D // num_heads
    scale = 1.0 / math.sqrt(Dh)
    kern = functools.partial(_attention_kernel, num_heads=num_heads, scale=scale)
    return pl.pallas_call(
        kern,
        out_shape=(
            jax.ShapeDtypeStruct((B, num_heads, S, Dh), jnp.float32),
            jax.ShapeDtypeStruct((B, num_heads, S, S), jnp.float32),
        ),
        grid=(B,),
        in_specs=[
            pl.BlockSpec((3, 1, S, D), lambda b: (0, b, 0, 0)),
            pl.BlockSpec((1, S, S), lambda b: (b, 0, 0)),   # one mask per batch
        ],
        out_specs=(
            pl.BlockSpec((1, num_heads, S, Dh), lambda b: (b, 0, 0, 0)),
            pl.BlockSpec((1, num_heads, S, S), lambda b: (b, 0, 0, 0)),
        ),
        compiler_params=pltpu.CompilerParams(
            dimension_semantics=("parallel",),
            vmem_limit_bytes=_VMEM_LIMIT),
    )(qkv, mask_f)


# ---------------------------------------------------------------------------
# Kernel 3: fc0 projection + residual add + LayerNorm, row-tiled over B*S
# ---------------------------------------------------------------------------
def _out_kernel(ctx_ref, res_ref, w_ref, b_ref, g_ref, beta_ref, o_ref, *, eps):
    y = (jnp.dot(ctx_ref[...], w_ref[...],
                 preferred_element_type=jnp.float32) + b_ref[...])
    z = res_ref[...] + y
    mean = jnp.mean(z, axis=-1, keepdims=True)
    var = jnp.mean(jnp.square(z - mean), axis=-1, keepdims=True)
    zn = (z - mean) * jax.lax.rsqrt(var + eps)
    o_ref[...] = zn * g_ref[...] + beta_ref[...]


def pallas_output(ctx2d, res2d, w_o, b_o, gamma, beta, *, eps=1e-5, block_rows=256):
    BS, D = ctx2d.shape
    tm = _pick_rows(BS, block_rows)
    kern = functools.partial(_out_kernel, eps=eps)
    row_spec = pl.BlockSpec((tm, D), lambda i: (i, 0))
    vec_spec = pl.BlockSpec((1, D), lambda i: (0, 0))
    return pl.pallas_call(
        kern,
        out_shape=jax.ShapeDtypeStruct((BS, D), jnp.float32),
        grid=(BS // tm,),
        in_specs=[row_spec, row_spec,
                  pl.BlockSpec((D, D), lambda i: (0, 0)),   # W_o resident
                  vec_spec, vec_spec, vec_spec],
        out_specs=row_spec,
        compiler_params=pltpu.CompilerParams(
            dimension_semantics=("parallel",),
            vmem_limit_bytes=_VMEM_LIMIT),
    )(ctx2d, res2d, w_o, b_o.reshape(1, D), gamma.reshape(1, D), beta.reshape(1, D))


# ---------------------------------------------------------------------------
# Full forward (glue is only view-reshapes; all math in Pallas)
# ---------------------------------------------------------------------------
def multi_head_attention_forward(params, q, k, v, attn_mask_bool, num_heads):
    B, S, D = q.shape

    residual2d = q.reshape(B * S, D)                    # pure view

    qkv2d = pallas_qkv_proj(
        q.reshape(B * S, D), k.reshape(B * S, D), v.reshape(B * S, D),
        params["wq"], params["wk"], params["wv"],
        params["bq"], params["bk"], params["bv"])
    qkv = qkv2d.reshape(3, B, S, D)                     # pure view

    # Mask stays (B, S, S); all heads share the same block in-kernel.
    mask_f = attn_mask_bool.astype(jnp.float32)

    ctx_h, attn = pallas_attention(qkv, mask_f, num_heads)

    # PyTorch does context.view(B, -1, D) WITHOUT transposing heads back:
    # reproduce exactly with a row-major reshape of (B, H, S, Dh).
    ctx2d = ctx_h.reshape(B * S, D)                     # pure view

    out2d = pallas_output(ctx2d, residual2d,
                          params["wo"], params["bo"],
                          params["gamma"], params["beta"])
    return out2d.reshape(B, S, D), attn


# ---------------------------------------------------------------------------
# Pure-JAX reference (for correctness check)
# ---------------------------------------------------------------------------
def reference_forward(params, q, k, v, attn_mask_bool, num_heads):
    B, S, D = q.shape
    Dh = D // num_heads
    residual = q
    q_p = q @ params["wq"] + params["bq"]
    k_p = k @ params["wk"] + params["bk"]
    v_p = v @ params["wv"] + params["bv"]
    qh = q_p.reshape(B, S, num_heads, Dh).transpose(0, 2, 1, 3)
    kh = k_p.reshape(B, S, num_heads, Dh).transpose(0, 2, 1, 3)
    vh = v_p.reshape(B, S, num_heads, Dh).transpose(0, 2, 1, 3)
    scores = jnp.einsum("bhqd,bhkd->bhqk", qh, kh) / math.sqrt(Dh)
    mask = jnp.broadcast_to(attn_mask_bool[:, None, :, :], scores.shape)
    scores = jnp.where(mask, -1e9, scores)
    attn = jax.nn.softmax(scores, axis=-1)
    ctx_h = jnp.einsum("bhqk,bhkd->bhqd", attn, vh)
    ctx = ctx_h.reshape(B, S, D)
    out = ctx @ params["wo"] + params["bo"]
    z = residual + out
    mean = jnp.mean(z, axis=-1, keepdims=True)
    var = jnp.mean((z - mean) ** 2, axis=-1, keepdims=True)
    zn = (z - mean) / jnp.sqrt(var + 1e-5)
    return zn * params["gamma"] + params["beta"], attn


def init_params(key, D):
    bound = 1.0 / math.sqrt(D)
    ks = jax.random.split(key, 8)
    u = lambda k, shp: jax.random.uniform(k, shp, jnp.float32, -bound, bound)
    return {
        "wq": u(ks[0], (D, D)), "bq": u(ks[1], (D,)),
        "wk": u(ks[2], (D, D)), "bk": u(ks[3], (D,)),
        "wv": u(ks[4], (D, D)), "bv": u(ks[5], (D,)),
        "wo": u(ks[6], (D, D)), "bo": u(ks[7], (D,)),
        "gamma": jnp.ones((D,), jnp.float32),
        "beta": jnp.zeros((D,), jnp.float32),
    }


if __name__ == "__main__":
    B, S, D, H = 2, 8, 32, 4

    root = jax.random.PRNGKey(0)
    kp, kq, kk, kv = jax.random.split(root, 4)
    params = init_params(kp, D)

    q = jax.random.normal(kq, (B, S, D), jnp.float32)
    k = jax.random.normal(kk, (B, S, D), jnp.float32)
    v = jax.random.normal(kv, (B, S, D), jnp.float32)

    # causal-style boolean mask: True == masked (future positions)
    idx = jnp.arange(S)
    attn_mask = jnp.broadcast_to(idx[None, :] > idx[:, None], (B, S, S))

    out, attn = multi_head_attention_forward(params, q, k, v, attn_mask, H)
    out = jax.block_until_ready(out)
    attn = jax.block_until_ready(attn)

    out_ref, attn_ref = reference_forward(params, q, k, v, attn_mask, H)
    assert out.shape == (B, S, D) and attn.shape == (B, H, S, S)
    # Tolerances account for pl.reciprocal(approx=True) in the softmax denom.
    assert jnp.allclose(attn, attn_ref, atol=2e-3, rtol=2e-3)
    assert jnp.allclose(out, out_ref, atol=5e-3, rtol=5e-3)

    print("KERNEL_OK")
</pallas_src>

<mosaic_0001>
module attributes {stable_mosaic.version = 11 : i64} {
  func.func @_qkv_proj_kernel(%arg0: i32, %arg1: memref<16x32xf32, #tpu.memory_space<vmem>>, %arg2: memref<16x32xf32, #tpu.memory_space<vmem>>, %arg3: memref<16x32xf32, #tpu.memory_space<vmem>>, %arg4: memref<32x32xf32, #tpu.memory_space<vmem>>, %arg5: memref<32x32xf32, #tpu.memory_space<vmem>>, %arg6: memref<32x32xf32, #tpu.memory_space<vmem>>, %arg7: memref<1x32xf32, #tpu.memory_space<vmem>>, %arg8: memref<1x32xf32, #tpu.memory_space<vmem>>, %arg9: memref<1x32xf32, #tpu.memory_space<vmem>>, %arg10: memref<3x16x32xf32, #tpu.memory_space<vmem>>) attributes {dimension_semantics = [#tpu.dimension_semantics<parallel>], iteration_bounds = array<i64: 1>, scalar_prefetch = 0 : i64, scratch_operands = 0 : i64, tpu.core_type = #tpu.core_type<tc>, window_params = [{transform_indices = @transform_0, window_bounds = array<i64: 16, 32>}, {transform_indices = @transform_1, window_bounds = array<i64: 16, 32>}, {transform_indices = @transform_2, window_bounds = array<i64: 16, 32>}, {pipeline_mode = #tpu.pipeline_mode<synchronous>, transform_indices = @transform_3, window_bounds = array<i64: 32, 32>}, {pipeline_mode = #tpu.pipeline_mode<synchronous>, transform_indices = @transform_4, window_bounds = array<i64: 32, 32>}, {pipeline_mode = #tpu.pipeline_mode<synchronous>, transform_indices = @transform_5, window_bounds = array<i64: 32, 32>}, {pipeline_mode = #tpu.pipeline_mode<synchronous>, transform_indices = @transform_6, window_bounds = array<i64: 1, 32>}, {pipeline_mode = #tpu.pipeline_mode<synchronous>, transform_indices = @transform_7, window_bounds = array<i64: 1, 32>}, {pipeline_mode = #tpu.pipeline_mode<synchronous>, transform_indices = @transform_8, window_bounds = array<i64: 1, 32>}, {transform_indices = @transform_9, window_bounds = array<i64: 3, 16, 32>}]} {
    %c0 = arith.constant 0 : index
    %c0_0 = arith.constant 0 : index
    %0 = vector.load %arg1[%c0, %c0_0] : memref<16x32xf32, #tpu.memory_space<vmem>>, vector<16x32xf32>
    %c0_1 = arith.constant 0 : index
    %c0_2 = arith.constant 0 : index
    %1 = vector.load %arg4[%c0_1, %c0_2] : memref<32x32xf32, #tpu.memory_space<vmem>>, vector<32x32xf32>
    %cst = arith.constant dense<0.000000e+00> : vector<16x32xf32>
    %2 = tpu.matmul %0, %1, %cst {dimension_numbers = #tpu.dot_dimension_numbers<[1], [0], [0], [1], [0, 0, 1, 1], [], []>} : vector<16x32xf32>, vector<32x32xf32>, vector<16x32xf32> -> vector<16x32xf32>
    %c0_3 = arith.constant 0 : index
    %c0_4 = arith.constant 0 : index
    %3 = vector.load %arg7[%c0_3, %c0_4] : memref<1x32xf32, #tpu.memory_space<vmem>>, vector<1x32xf32>
    %4 = vector.broadcast %3 : vector<1x32xf32> to vector<16x32xf32>
    %5 = arith.addf %2, %4 : vector<16x32xf32>
    %c0_5 = arith.constant 0 : index
    %c0_6 = arith.constant 0 : index
    %c0_7 = arith.constant 0 : index
    %6 = vector.load %arg10[%c0_5, %c0_6, %c0_7] : memref<3x16x32xf32, #tpu.memory_space<vmem>>, vector<1x16x32xf32>
    %7 = vector.shape_cast %6 : vector<1x16x32xf32> to vector<16x32xf32>
    %8 = vector.shape_cast %5 : vector<16x32xf32> to vector<1x16x32xf32>
    tpu.vector_store %arg10[%c0_5, %c0_6, %c0_7], %8 {strides = array<i32>} : memref<3x16x32xf32, #tpu.memory_space<vmem>>, vector<1x16x32xf32>,
    %c0_8 = arith.constant 0 : index
    %c0_9 = arith.constant 0 : index
    %9 = vector.load %arg2[%c0_8, %c0_9] : memref<16x32xf32, #tpu.memory_space<vmem>>, vector<16x32xf32>
    %c0_10 = arith.constant 0 : index
    %c0_11 = arith.constant 0 : index
    %10 = vector.load %arg5[%c0_10, %c0_11] : memref<32x32xf32, #tpu.memory_space<vmem>>, vector<32x32xf32>
    %cst_12 = arith.constant dense<0.000000e+00> : vector<16x32xf32>
    %11 = tpu.matmul %9, %10, %cst_12 {dimension_numbers = #tpu.dot_dimension_numbers<[1], [0], [0], [1], [0, 0, 1, 1], [], []>} : vector<16x32xf32>, vector<32x32xf32>, vector<16x32xf32> -> vector<16x32xf32>
    %c0_13 = arith.constant 0 : index
    %c0_14 = arith.constant 0 : index
    %12 = vector.load %arg8[%c0_13, %c0_14] : memref<1x32xf32, #tpu.memory_space<vmem>>, vector<1x32xf32>
    %13 = vector.broadcast %12 : vector<1x32xf32> to vector<16x32xf32>
    %14 = arith.addf %11, %13 : vector<16x32xf32>
    %c1 = arith.constant 1 : index
    %c0_15 = arith.constant 0 : index
    %c0_16 = arith.constant 0 : index
    %15 = vector.load %arg10[%c1, %c0_15, %c0_16] : memref<3x16x32xf32, #tpu.memory_space<vmem>>, vector<1x16x32xf32>
    %16 = vector.shape_cast %15 : vector<1x16x32xf32> to vector<16x32xf32>
    %17 = vector.shape_cast %14 : vector<16x32xf32> to vector<1x16x32xf32>
    tpu.vector_store %arg10[%c1, %c0_15, %c0_16], %17 {strides = array<i32>} : memref<3x16x32xf32, #tpu.memory_space<vmem>>, vector<1x16x32xf32>,
    %c0_17 = arith.constant 0 : index
    %c0_18 = arith.constant 0 : index
    %18 = vector.load %arg3[%c0_17, %c0_18] : memref<16x32xf32, #tpu.memory_space<vmem>>, vector<16x32xf32>
    %c0_19 = arith.constant 0 : index
    %c0_20 = arith.constant 0 : index
    %19 = vector.load %arg6[%c0_19, %c0_20] : memref<32x32xf32, #tpu.memory_space<vmem>>, vector<32x32xf32>
    %cst_21 = arith.constant dense<0.000000e+00> : vector<16x32xf32>
    %20 = tpu.matmul %18, %19, %cst_21 {dimension_numbers = #tpu.dot_dimension_numbers<[1], [0], [0], [1], [0, 0, 1, 1], [], []>} : vector<16x32xf32>, vector<32x32xf32>, vector<16x32xf32> -> vector<16x32xf32>
    %c0_22 = arith.constant 0 : index
    %c0_23 = arith.constant 0 : index
    %21 = vector.load %arg9[%c0_22, %c0_23] : memref<1x32xf32, #tpu.memory_space<vmem>>, vector<1x32xf32>
    %22 = vector.broadcast %21 : vector<1x32xf32> to vector<16x32xf32>
    %23 = arith.addf %20, %22 : vector<16x32xf32>
    %c2 = arith.constant 2 : index
    %c0_24 = arith.constant 0 : index
    %c0_25 = arith.constant 0 : index
    %24 = vector.load %arg10[%c2, %c0_24, %c0_25] : memref<3x16x32xf32, #tpu.memory_space<vmem>>, vector<1x16x32xf32>
    %25 = vector.shape_cast %24 : vector<1x16x32xf32> to vector<16x32xf32>
    %26 = vector.shape_cast %23 : vector<16x32xf32> to vector<1x16x32xf32>
    tpu.vector_store %arg10[%c2, %c0_24, %c0_25], %26 {strides = array<i32>} : memref<3x16x32xf32, #tpu.memory_space<vmem>>, vector<1x16x32xf32>,
    return
  }
  func.func @transform_0(%arg0: i32) -> (i32, i32) {
    %c0_i32 = arith.constant 0 : i32
    %c0_i32_0 = arith.constant 0 : i32
    return %arg0, %c0_i32 : i32, i32
  }
  func.func @transform_1(%arg0: i32) -> (i32, i32) {
    %c0_i32 = arith.constant 0 : i32
    %c0_i32_0 = arith.constant 0 : i32
    return %arg0, %c0_i32 : i32, i32
  }
  func.func @transform_2(%arg0: i32) -> (i32, i32) {
    %c0_i32 = arith.constant 0 : i32
    %c0_i32_0 = arith.constant 0 : i32
    return %arg0, %c0_i32 : i32, i32
  }
  func.func @transform_3(%arg0: i32) -> (i32, i32) {
    %c0_i32 = arith.constant 0 : i32
    %c0_i32_0 = arith.constant 0 : i32
    %c0_i32_1 = arith.constant 0 : i32
    return %c0_i32, %c0_i32_0 : i32, i32
  }
  func.func @transform_4(%arg0: i32) -> (i32, i32) {
    %c0_i32 = arith.constant 0 : i32
    %c0_i32_0 = arith.constant 0 : i32
    %c0_i32_1 = arith.constant 0 : i32
    return %c0_i32, %c0_i32_0 : i32, i32
  }
  func.func @transform_5(%arg0: i32) -> (i32, i32) {
    %c0_i32 = arith.constant 0 : i32
    %c0_i32_0 = arith.constant 0 : i32
    %c0_i32_1 = arith.constant 0 : i32
    return %c0_i32, %c0_i32_0 : i32, i32
  }
  func.func @transform_6(%arg0: i32) -> (i32, i32) {
    %c0_i32 = arith.constant 0 : i32
    %c0_i32_0 = arith.constant 0 : i32
    %c0_i32_1 = arith.constant 0 : i32
    return %c0_i32, %c0_i32_0 : i32, i32
  }
  func.func @transform_7(%arg0: i32) -> (i32, i32) {
    %c0_i32 = arith.constant 0 : i32
    %c0_i32_0 = arith.constant 0 : i32
    %c0_i32_1 = arith.constant 0 : i32
    return %c0_i32, %c0_i32_0 : i32, i32
  }
  func.func @transform_8(%arg0: i32) -> (i32, i32) {
    %c0_i32 = arith.constant 0 : i32
    %c0_i32_0 = arith.constant 0 : i32
    %c0_i32_1 = arith.constant 0 : i32
    return %c0_i32, %c0_i32_0 : i32, i32
  }
  func.func @transform_9(%arg0: i32) -> (i32, i32, i32) {
    %c0_i32 = arith.constant 0 : i32
    %c0_i32_0 = arith.constant 0 : i32
    %c0_i32_1 = arith.constant 0 : i32
    return %c0_i32, %arg0, %c0_i32_0 : i32, i32, i32
  }
}

</mosaic_0001>

<bundles_post_ra>
// kernel: tpu_custom_call.1
= control target key start
LH: loop header
LB: loop body
LE: loop exit
PB: predicated region body
PF: predicated region fallthrough
CT: control target
= control target key end

     0   :  { %14 = vsyncpa [#allocation3], 0  ;;  %s889_s0 = inlined_call_operand.hbm [shape: f32[16,32], index: 0, kind: input, shape index: {}]   ;;  %s890_s1 = inlined_call_operand.hbm [shape: f32[16,32], index: 1, kind: input, shape index: {}]   ;;  %s891_s2 = inlined_call_operand.hbm [shape: f32[16,32], index: 2, kind: input, shape index: {}]   ;;  %s892_s3 = inlined_call_operand.hbm [shape: f32[32,32], index: 3, kind: input, shape index: {}]   ;;  %s893_s4 = inlined_call_operand.hbm [shape: f32[32,32], index: 4, kind: input, shape index: {}]   ;;  %s894_s5 = inlined_call_operand.hbm [shape: f32[32,32], index: 5, kind: input, shape index: {}]   ;;  %s895_s6 = inlined_call_operand.vmem [shape: f32[1,32], index: 6, kind: input, shape index: {}]   ;;  %s896_s7 = inlined_call_operand.vmem [shape: f32[1,32], index: 7, kind: input, shape index: {}]   ;;  %s897_s8 = inlined_call_operand.vmem [shape: f32[1,32], index: 8, kind: input, shape index: {}]   ;;  %s898_s9 = inlined_call_operand.hbm [shape: f32[3,16,32], index: 9, kind: output, shape index: {}]  }
   0x1   :  { %15 = vsyncpa [#allocation6], 0 }
   0x2   :  { %16 = vsyncpa [#allocation9], 0 }
   0x3   :  { %17 = vsyncpa [#allocation12], 0 }
   0x4   :  { %18 = vsyncpa [#allocation4], 0  ;;  %s683_s30 = smov [#allocation5]   ;;  %s684_s11 = smov [#allocation8]  }
   0x5   :  { %s36_s10 = sshll.u32 %s683_s30, 4  ;;  %s60_s12 = sshll.u32 %s684_s11, 4  ;;  %s37_s10 = int_to_ptr.vmem [resolvable:$true] %s36_s10  ;;  %s742_s12 = int_to_ptr.vmem [resolvable:$true] %s60_s12 }
   0x6   :  { %s519_s15 = scalar_lea.hbm %s890_s1, 256 }
   0x7   :  { %p520_p0 = scmp.ne.s32.totalorder %s890_s1, %s519_s15  ;;  %p523_p1 = scmp.lt.u32.totalorder %s519_s15, %s890_s1 }
   0x9   :  { %p525_p2 = pnand %p523_p1, %p520_p0 }
   0xb   :  { %528 = shalt.err (!%p525_p2)
}
   0xc   :  { %s529_s20 = scalar_lea.vmem %s37_s10, 256  ;;  %p534_p4 = scmp.lt.s32.totalorder %s37_s10, %s37_s10 }
   0xd   :  { %p530_p3 = scmp.ne.s32.totalorder %s37_s10, %s529_s20  ;;  %p535_p5 = scmp.lt.s32.totalorder %s529_s20, %s529_s20 }
   0xf   :  { %p536_p6 = por %p535_p5, %p534_p4 }
  0x11   :  { %p537_p7 = pnand %p536_p6, %p530_p3 }
  0x13   :  { %540 = shalt.err (!%p537_p7)
}
  0x14   :  { %s685_s21 = smov 128   ;;  %s686_s22 = smov 8  }
  0x15   :  { %42 = dma.hbm_to_vmem [thread:$0]  %s890_s1, 256, %s37_s10, [#allocation6], %s685_s21, %s685_s21, %s686_s22  }
  0x16   :  { %s541_s27 = scalar_lea.hbm %s892_s3, 512 }
  0x17   :  { %p542_p8 = scmp.ne.s32.totalorder %s892_s3, %s541_s27  ;;  %p545_p9 = scmp.lt.u32.totalorder %s541_s27, %s892_s3 }
  0x19   :  { %p547_p10 = pnand %p545_p9, %p542_p8 }
  0x1b   :  { %550 = shalt.err (!%p547_p10)
}
  0x1c   :  { %s551_s13 = scalar_lea.vmem %s742_s12, 512  ;;  %p556_p12 = scmp.lt.s32.totalorder %s742_s12, %s742_s12 }
  0x1d   :  { %p552_p11 = scmp.ne.s32.totalorder %s742_s12, %s551_s13  ;;  %p557_p13 = scmp.lt.s32.totalorder %s551_s13, %s551_s13 }
  0x1f   :  { %p558_p0 = por %p557_p13, %p556_p12 }
  0x21   :  { %p559_p1 = pnand %p558_p0, %p552_p11 }
  0x23   :  { %562 = shalt.err (!%p559_p1)
}
  0x24   :  { %66 = dma.hbm_to_vmem [thread:$0]  %s892_s3, 512, %s742_s12, [#allocation9], %s685_s21, %s685_s21, %s686_s22  }
  0x25   :  { %s687_s14 = smov [#allocation2]   ;;  %s688_s16 = smov [#allocation7]  }
  0x26   :  { %s24_s15 = sshll.u32 %s687_s14, 4  ;;  %s48_s17 = sshll.u32 %s688_s16, 4  ;;  %s25_s15 = int_to_ptr.vmem [resolvable:$true] %s24_s15  ;;  %s779_s17 = int_to_ptr.vmem [resolvable:$true] %s48_s17 }
  0x27   :  { %s563_s20 = scalar_lea.hbm %s889_s0, 256 }
  0x28   :  { %p564_p2 = scmp.ne.s32.totalorder %s889_s0, %s563_s20  ;;  %p567_p3 = scmp.lt.u32.totalorder %s563_s20, %s889_s0 }
  0x2a   :  { %p569_p4 = pnand %p567_p3, %p564_p2 }
  0x2c   :  { %572 = shalt.err (!%p569_p4)
}
  0x2d   :  { %s573_s3 = scalar_lea.vmem %s25_s15, 256  ;;  %p578_p6 = scmp.lt.s32.totalorder %s25_s15, %s25_s15 }
  0x2e   :  { %p574_p5 = scmp.ne.s32.totalorder %s25_s15, %s573_s3  ;;  %p579_p7 = scmp.lt.s32.totalorder %s573_s3, %s573_s3 }
  0x30   :  { %p580_p8 = por %p579_p7, %p578_p6 }
  0x32   :  { %p581_p9 = pnand %p580_p8, %p574_p5 }
  0x34   :  { %584 = shalt.err (!%p581_p9)
}
  0x35   :  { %30 = dma.hbm_to_vmem [thread:$0]  %s889_s0, 256, %s25_s15, [#allocation3], %s685_s21, %s685_s21, %s686_s22  }
  0x36   :  { %s585_s30 = scalar_lea.hbm %s891_s2, 256 }
  0x37   :  { %p586_p10 = scmp.ne.s32.totalorder %s891_s2, %s585_s30  ;;  %p589_p11 = scmp.lt.u32.totalorder %s585_s30, %s891_s2 }
  0x39   :  { %p591_p12 = pnand %p589_p11, %p586_p10 }
  0x3b   :  { %594 = shalt.err (!%p591_p12)
}
  0x3c   :  { %s595_s14 = scalar_lea.vmem %s779_s17, 256  ;;  %p600_p0 = scmp.lt.s32.totalorder %s779_s17, %s779_s17 }
  0x3d   :  { %p596_p13 = scmp.ne.s32.totalorder %s779_s17, %s595_s14  ;;  %p601_p1 = scmp.lt.s32.totalorder %s595_s14, %s595_s14 }
  0x3f   :  { %p602_p2 = por %p601_p1, %p600_p0 }
  0x41   :  { %p603_p3 = pnand %p602_p2, %p596_p13 }
  0x43   :  { %606 = shalt.err (!%p603_p3)
}
  0x44   :  { %54 = dma.hbm_to_vmem [thread:$0]  %s891_s2, 256, %s779_s17, [#allocation6], %s685_s21, %s685_s21, %s686_s22  }
  0x45   :  { %s689_s16 = smov [#allocation10]   ;;  %s690_s19 = smov [#allocation11]  }
  0x46   :  { %s72_s18 = sshll.u32 %s689_s16, 4  ;;  %s84_s20 = sshll.u32 %s690_s19, 4  ;;  %s73_s18 = int_to_ptr.vmem [resolvable:$true] %s72_s18  ;;  %s816_s20 = int_to_ptr.vmem [resolvable:$true] %s84_s20 }
  0x47   :  { %s607_s25 = scalar_lea.hbm %s893_s4, 512 }
  0x48   :  { %p608_p4 = scmp.ne.s32.totalorder %s893_s4, %s607_s25  ;;  %p611_p5 = scmp.lt.u32.totalorder %s607_s25, %s893_s4 }
  0x4a   :  { %p613_p6 = pnand %p611_p5, %p608_p4 }
  0x4c   :  { %616 = shalt.err (!%p613_p6)
}
  0x4d   :  { %s617_s2 = scalar_lea.vmem %s73_s18, 512  ;;  %p622_p8 = scmp.lt.s32.totalorder %s73_s18, %s73_s18 }
  0x4e   :  { %p618_p7 = scmp.ne.s32.totalorder %s73_s18, %s617_s2  ;;  %p623_p9 = scmp.lt.s32.totalorder %s617_s2, %s617_s2 }
  0x50   :  { %p624_p10 = por %p623_p9, %p622_p8 }
  0x52   :  { %p625_p11 = pnand %p624_p10, %p618_p7 }
  0x54   :  { %628 = shalt.err (!%p625_p11)
}
  0x55   :  { %78 = dma.hbm_to_vmem [thread:$0]  %s893_s4, 512, %s73_s18, [#allocation9], %s685_s21, %s685_s21, %s686_s22  }
  0x56   :  { %s629_s11 = scalar_lea.hbm %s894_s5, 512 }
  0x57   :  { %p630_p12 = scmp.ne.s32.totalorder %s894_s5, %s629_s11  ;;  %p633_p13 = scmp.lt.u32.totalorder %s629_s11, %s894_s5 }
  0x59   :  { %p635_p0 = pnand %p633_p13, %p630_p12 }
  0x5b   :  { %638 = shalt.err (!%p635_p0)
}
  0x5c   :  { %s639_s0 = scalar_lea.vmem %s816_s20, 512  ;;  %p644_p2 = scmp.lt.s32.totalorder %s816_s20, %s816_s20 }
  0x5d   :  { %p640_p1 = scmp.ne.s32.totalorder %s816_s20, %s639_s0  ;;  %p645_p3 = scmp.lt.s32.totalorder %s639_s0, %s639_s0 }
  0x5f   :  { %p646_p4 = por %p645_p3, %p644_p2 }
  0x61   :  { %p647_p5 = pnand %p646_p4, %p640_p1 }
  0x63   :  { %650 = shalt.err (!%p647_p5)
}
  0x64   :  { %90 = dma.hbm_to_vmem [thread:$0]  %s894_s5, 512, %s816_s20, [#allocation12], %s685_s21, %s685_s21, %s686_s22  }
  0x65   :  { %673 = dma.done.wait [#allocation3], 256  }
  0x66   :  { %674 = vsyncadd [#allocation3], 4294967040 }
  0x67   :  { %675 = dma.done.wait [#allocation6], 512  }
  0x68   :  { %676 = vsyncadd [#allocation6], 4294966784 }
  0x69   :  { %677 = dma.done.wait [#allocation9], 1024  }
  0x6a   :  { %678 = vsyncadd [#allocation9], 4294966272 }
  0x6b   :  { %679 = dma.done.wait [#allocation12], 512  }
  0x6c   :  { %680 = vsyncadd [#allocation12], 4294966784  ;;  %vm128_vm0 = vcmask 261120   ;;  %v117_v0 = vld [vmem:[#allocation8] sm:$0xff]  ;;  %v118_v1 = vld [vmem:[#allocation8 + $0x8] sm:$0xff] }
  0x6d   :  { %v119_v2 = vld [vmem:[#allocation8 + $0x10] sm:$0xff]  ;;  %v486_v3 = vpack.c.bf16 %v118_v1, %v117_v0  ;;  %v120_v4 = vld [vmem:[#allocation8 + $0x18] sm:$0xff]  ;;  %v214_v6 = vld [vmem:[#allocation10] sm:$0xff] }
  0x6e   :  { %v115_v5 = vld [vmem:[#allocation2] sm:$0xff]  ;;  %v490_v7 = vpack.c.bf16 %v120_v4, %v119_v2  ;;  %v215_v8 = vld [vmem:[#allocation10 + $0x8] sm:$0xff]  ;;  %v311_v9 = vld [vmem:[#allocation11] sm:$0xff] }
  0x6f   :  { %461 = vmatprep.mubr.msk.f32.mxu0 %vm128_vm0, %v115_v5  ;;  %487 = vmatprep.subr.bf16.mxu0 %v486_v3  ;;  %v494_v10 = vpack.c.bf16 %v215_v8, %v214_v6  ;;  %v312_v11 = vld [vmem:[#allocation11 + $0x8] sm:$0xff]  ;;  %v216_v12 = vld [vmem:[#allocation10 + $0x10] sm:$0xff]  ;;  %v217_v13 = vld [vmem:[#allocation10 + $0x18] sm:$0xff] }
  0x70   :  { %489 = vmatpush3.bf16.msra.mxu0 %v486_v3  ;;  %v498_v14 = vpack.c.bf16 %v217_v13, %v216_v12  ;;  %v212_v15 = vld [vmem:[#allocation5] sm:$0xff]  ;;  %v502_v16 = vpack.c.bf16 %v312_v11, %v311_v9  ;;  %v313_v17 = vld [vmem:[#allocation11 + $0x10] sm:$0xff]  ;;  %v314_v18 = vld [vmem:[#allocation11 + $0x18] sm:$0xff] }
  0x71   :  { %491 = vmatprep.subr.bf16.mxu0 %v490_v7  ;;  %495 = vmatprep.subr.bf16.mxu1 %v494_v10  ;;  %v116_v19 = vld [vmem:[#allocation2 + $0x8] sm:$0xff]  ;;  %v506_v20 = vpack.c.bf16 %v314_v18, %v313_v17  ;;  %v309_v21 = vld [vmem:[#allocation7] sm:$0xff]  ;;  %v213_v22 = vld [vmem:[#allocation5 + $0x8] sm:$0xff] }
  0x72   :  { %497 = vmatpush3.bf16.msra.mxu1 %v494_v10  ;;  %472 = vmatprep.mubr.msk.f32.mxu1 %vm128_vm0, %v212_v15  ;;  %v310_v23 = vld [vmem:[#allocation7 + $0x8] sm:$0xff]  ;;  %v426_v24 = vld [vmem:[%s895_s6] ss:$0 sm:$0xff] }
  0x73   :  { %499 = vmatprep.subr.bf16.mxu1 %v498_v14  ;;  %v429_v26 = vld [vmem:[%s896_s7] ss:$0 sm:$0xff]  ;;  %s691_s7 = smov [#allocation13]  }
  0x74   :  { %493 = vmatpush3.bf16.msra.mxu0 %v490_v7  ;;  %v432_v34 = vld [vmem:[%s897_s8] ss:$0 sm:$0xff]  ;;  %s411_s23 = sshll.u32 %s691_s7, 4  ;;  %s412_s23 = int_to_ptr.vmem [resolvable:$true] %s411_s23 }
  0x75   :  { %503 = vmatprep.subr.bf16.mxu0 %v502_v16  ;;  %s651_s24 = scalar_lea.vmem %s412_s23, 768  ;;  %p656_p7 = scmp.lt.s32.totalorder %s412_s23, %s412_s23 }
  0x76   :  { %501 = vmatpush3.bf16.msra.mxu1 %v498_v14  ;;  %p652_p6 = scmp.ne.s32.totalorder %s412_s23, %s651_s24  ;;  %p657_p8 = scmp.lt.s32.totalorder %s651_s24, %s651_s24 }
  0x77   :  { %462 = vmatmul.mubr.msk.f32.vlgmr.msra.gmra.mrb[0].mxu0 %vm128_vm0, %v116_v19 }
  0x78   :  { %505 = vmatpush3.bf16.msra.mxu0 %v502_v16  ;;  %483 = vmatprep.mubr.msk.f32.mxu0 %vm128_vm0, %v309_v21  ;;  %p658_p9 = por %p657_p8, %p656_p7 }
  0x79   :  { %507 = vmatprep.subr.bf16.mxu0 %v506_v20  ;;  %473 = vmatmul.mubr.msk.f32.vlgmr.msra.gmra.mrb[0].mxu1 %vm128_vm0, %v213_v22 }
  0x7a   :  { %p659_p10 = pnand %p658_p9, %p652_p6 }
  0x7c   :  { %509 = vmatpush3.bf16.msra.mxu0 %v506_v20 }
  0x7f   :  { %484 = vmatmul.mubr.msk.f32.vlgmr.msra.gmra.mrb[2].mxu0 %vm128_vm0, %v310_v23 }
 0x14a   :  { %v463_v25 = vpop.f32.mrb[0].mxu0 }
 0x14b   :  { %v207_v27 = vadd.f32 %v463_v25, %v426_v24  ;;  %v201_v28 = vpop.f32.mrb[1].mxu0 }
 0x14c   :  { %v202_v29 = vadd.f32 %v426_v24, %v201_v28  ;;  %v474_v30 = vpop.f32.mrb[0].mxu1 }
 0x14d   :  { %211 = vst.msk [vmem:[#allocation13 + $0x8] sm:$0xff] %vm128_vm0, %v207_v27  ;;  %v303_v31 = vadd.f32 %v474_v30, %v429_v26  ;;  %v297_v32 = vpop.f32.mrb[1].mxu1 }
 0x14e   :  { %210 = vst.msk [vmem:[#allocation13] sm:$0xff] %vm128_vm0, %v202_v29  ;;  %v298_v33 = vadd.f32 %v429_v26, %v297_v32 }
 0x14f   :  { %308 = vst.msk [vmem:[#allocation13 + $0x18] sm:$0xff] %vm128_vm0, %v303_v31 }
 0x150   :  { %307 = vst.msk [vmem:[#allocation13 + $0x10] sm:$0xff] %vm128_vm0, %v298_v33 }
 0x152   :  { %v485_v35 = vpop.f32.mrb[2].mxu0 }
 0x153   :  { %v400_v36 = vadd.f32 %v485_v35, %v432_v34  ;;  %v394_v37 = vpop.f32.mrb[3].mxu0 }
 0x154   :  { %v395_v38 = vadd.f32 %v432_v34, %v394_v37 }
 0x155   :  { %405 = vst.msk [vmem:[#allocation13 + $0x28] sm:$0xff] %vm128_vm0, %v400_v36 }
 0x156   :  { %404 = vst.msk [vmem:[#allocation13 + $0x20] sm:$0xff] %vm128_vm0, %v395_v38 }
 0x157   :  { %662 = shalt.err (!%p659_p10)
}
 0x158   :  { %s663_s26 = scalar_lea.hbm %s898_s9, 768 }
 0x159   :  { %p664_p11 = scmp.ne.s32.totalorder %s898_s9, %s663_s26  ;;  %p667_p12 = scmp.lt.u32.totalorder %s663_s26, %s898_s9 }
 0x15b   :  { %p669_p13 = pnand %p667_p12, %p664_p11 }
 0x15d   :  { %672 = shalt.err (!%p669_p13)
}
 0x15e   :  { %417 = dma.vmem_to_hbm [thread:$0]  %s412_s23, 768, %s898_s9, [#allocation4], %s685_s21, %s685_s21, %s686_s22  }
 0x15f   :  { %681 = dma.done.wait [#allocation4], 768  }
 0x160   :  { %682 = vsyncadd [#allocation4], 4294966528 }
 0x161   :  { %421 = vsyncpa [#allocation3], 1 }
 0x162   :  { %422 = vsyncpa [#allocation6], 1 }
 0x163   :  { %423 = vsyncpa [#allocation9], 1 }
 0x164   :  { %424 = vsyncpa [#allocation12], 1 }
 0x165   :  { %425 = vsyncpa [#allocation4], 1 }

</bundles_post_ra>
